<compile_context>
chip_gen: v7x
topology: tpu7x:2x2x1
jax: 0.10.0
libtpu: 0.0.40
codegen_flags: <defaults>
</compile_context>

<pallas_src>
import functools

import numpy as np
import jax
import jax.numpy as jnp
from jax.experimental import pallas as pl
from jax.experimental.pallas import tpu as pltpu


def _round_up(v, m):
    return (v + m - 1) // m * m


# ---------------- Fused Pallas kernel (hot path) ----------------

def qmm_fused_kernel(x_ref, w_ref, lw_ref, lb_ref, mask_ref, o_ref, *,
                     owp, mc, n_chunks, cout_p):
    """One grid step = one batch element n (whole image).

    x_ref    : [1, 4, PM, C]      bf16 stride-2 parity planes of padded image,
                                  plane index = (kh%2)*2 + (kw%2), flattened rows
    w_ref    : [9, C, COUT_P]     bf16 conv weight, tap-major (kh*3 + kw)
    lw_ref   : [COUT_P, DIMS_P]   f32 linear weight, pre-scaled by 1/(OH*OW)
    lb_ref   : [1, DIMS_P]        f32 linear bias (zero padded)
    mask_ref : [n_chunks*MC, 1]   f32 1.0 for valid conv-output rows else 0.0
    o_ref    : [1, 1, DIMS_P]     f32 lane-dense output row of batch n
    """
    pooled = jnp.zeros((1, cout_p), jnp.float32)

    # Static Python loop over row chunks: every slice below has a static start,
    # so patch extraction is plain (possibly sublane-shifted) VMEM slicing.
    for c in range(n_chunks):
        start = c * mc
        acc = jnp.zeros((mc, cout_p), jnp.float32)
        for kh in range(3):
            for kw in range(3):
                plane = (kh % 2) * 2 + (kw % 2)
                tap_start = (kh // 2) * owp + (kw // 2) + start
                xs = x_ref[0, plane, pl.ds(tap_start, mc), :]     # [MC, C] bf16
                acc += jnp.dot(xs, w_ref[kh * 3 + kw],
                               preferred_element_type=jnp.float32)
        y = jnp.maximum(acc, 0.0)                      # ReLU in f32
        y = y * mask_ref[pl.ds(start, mc), :]          # zero junk / padding rows
        pooled = pooled + jnp.sum(y, axis=0, keepdims=True)

    out = jnp.dot(pooled, lw_ref[...],
                  preferred_element_type=jnp.float32) + lb_ref[...]
    o_ref[0] = out.astype(o_ref.dtype)


# ---------------- Wrapper (glue in plain JAX) ----------------

def qmm_forward(x, conv_w, lin_w, lin_b):
    """
    x:      [N, C, H, W]          float32 (NCHW, PyTorch convention)
    conv_w: [KH, KW, Cin, Cout]   HWIO (Cout = 2*Cin), no bias
    lin_w:  [Cout, dims]
    lin_b:  [dims]
    returns [N, dims] float32
    """
    N, C, H, W = x.shape
    KH, KW, Cin, Cout = conv_w.shape
    stride, pad = 2, 1
    OH = (H + 2 * pad - KH) // stride + 1
    OW = (W + 2 * pad - KW) // stride + 1
    dims = lin_w.shape[1]

    LANES = 128
    cout_p = _round_up(Cout, LANES)
    dims_p = _round_up(dims, LANES)

    OHP, OWP = OH + 1, OW + 1            # parity-plane extents (rows, cols)
    M_over = (OH - 1) * OWP + OW         # flat row span covering every output

    # Row-chunk size inside the kernel (bounds the f32 conv intermediate);
    # multiple of 16 rows for bf16 MXU feed.
    MAX_CHUNKS = 16
    if M_over <= 256:
        MC = _round_up(M_over, 16)
    else:
        MC = _round_up(max(256, -(-M_over // MAX_CHUNKS)), 16)
    n_chunks = -(-M_over // MC)

    # ---- input prep (XLA glue): NCHW -> padded NHWC -> 4 stride-2 parity
    # planes, flattened over (row, col).  Bytes ~= input bytes (no im2col
    # expansion); the 9 conv taps become static shifted slices in-kernel.
    x_nhwc = jnp.transpose(x, (0, 2, 3, 1)).astype(jnp.bfloat16)
    x_pad = jnp.pad(x_nhwc, ((0, 0), (pad, pad), (pad, pad), (0, 0)))
    PM_nat = OHP * OWP
    PM = _round_up(max(PM_nat, OWP + 1 + n_chunks * MC), 8)
    planes = []
    for ph in range(2):
        for pw in range(2):
            p = x_pad[:, ph::2, pw::2, :]                     # [N, ~OHP, ~OWP, C]
            p = jnp.pad(p, ((0, 0), (0, OHP - p.shape[1]),
                            (0, OWP - p.shape[2]), (0, 0)))
            p = p.reshape(N, PM_nat, C)
            planes.append(jnp.pad(p, ((0, 0), (0, PM - PM_nat), (0, 0))))
    x_pp = jnp.stack(planes, axis=1)                          # [N, 4, PM, C] bf16

    # Conv weight: tap-major [9, C, Cout_p] bf16 (Cout zero-padded to 128 lanes).
    w_mat = jnp.pad(conv_w.reshape(KH * KW, Cin, Cout),
                    ((0, 0), (0, 0), (0, cout_p - Cout))).astype(jnp.bfloat16)

    # Fold 1/(OH*OW) pooling scale into the linear weight; pad lane dims to 128.
    lw = jnp.pad(lin_w.astype(jnp.float32) * (1.0 / float(OH * OW)),
                 ((0, cout_p - Cout), (0, dims_p - dims)))
    lb = jnp.pad(lin_b.astype(jnp.float32), (0, dims_p - dims)).reshape(1, dims_p)

    # Validity mask: flat row rel = oh*OWP + ow is a real conv output iff
    # (rel % OWP) < OW and rel < M_over (junk columns + chunk padding -> 0).
    rel = np.arange(n_chunks * MC)
    mask_np = (((rel % OWP) < OW) & (rel < M_over)).astype(np.float32)
    mask = jnp.asarray(mask_np).reshape(n_chunks * MC, 1)

    # VMEM budget: double-buffered inputs + chunk intermediate + slack, capped
    # at 64 MiB so the same config is legal on v7x (physical VMEM 64 MiB).
    in_block_bytes = 4 * PM * C * 2
    resident_bytes = (KH * KW * C * cout_p * 2 + cout_p * dims_p * 4
                      + dims_p * 4 + n_chunks * MC * 4)
    est = 2 * (in_block_bytes + resident_bytes) + 2 * MC * cout_p * 4 + (4 << 20)
    vmem_limit = int(min(max(est, 32 << 20), 64 << 20))
    # TODO(synk): for very large images (whole-image parity planes > ~24 MiB per
    # batch) fall back to spatial row-band tiling with manual halo DMA instead of
    # whole-image blocks; not needed at typical QMM feature-map sizes.

    flops = N * (2 * KH * KW * M_over * C * cout_p + 2 * cout_p * dims_p)
    bytes_accessed = (x_pp.size * 2 + w_mat.size * 2 + lw.size * 4
                      + lb.size * 4 + mask.size * 4 + N * dims_p * 4)

    kernel = functools.partial(qmm_fused_kernel, owp=OWP, mc=MC,
                               n_chunks=n_chunks, cout_p=cout_p)

    out_p = pl.pallas_call(
        kernel,
        out_shape=jax.ShapeDtypeStruct((N, 1, dims_p), jnp.float32),
        grid=(N,),
        in_specs=[
            pl.BlockSpec((1, 4, PM, C), lambda n: (n, 0, 0, 0)),        # parity planes
            pl.BlockSpec((KH * KW, Cin, cout_p), lambda n: (0, 0, 0)),  # conv weight
            pl.BlockSpec((cout_p, dims_p), lambda n: (0, 0)),           # linear weight
            pl.BlockSpec((1, dims_p), lambda n: (0, 0)),                # linear bias
            pl.BlockSpec((n_chunks * MC, 1), lambda n: (0, 0)),         # validity mask
        ],
        out_specs=pl.BlockSpec((1, 1, dims_p), lambda n: (n, 0, 0)),
        compiler_params=pltpu.CompilerParams(
            # Batch axis is "parallel" so v7x shards it across its 2 TensorCores.
            # TODO(synk): when N is 1 / odd on v7x, split the row chunks across a
            # leading core axis of size 2 to avoid an idle TensorCore.
            dimension_semantics=("parallel",),
            vmem_limit_bytes=vmem_limit),
        cost_estimate=pl.CostEstimate(
            flops=flops, transcendentals=0, bytes_accessed=bytes_accessed),
    )(x_pp, w_mat, lw, lb, mask)

    return out_p[:, 0, :dims]


# ---------------- Pure-JAX reference (for sanity check) ----------------

def qmm_reference(x, conv_w, lin_w, lin_b):
    x_nhwc = jnp.transpose(x, (0, 2, 3, 1))
    y = jax.lax.conv_general_dilated(
        x_nhwc, conv_w, window_strides=(2, 2), padding=((1, 1), (1, 1)),
        dimension_numbers=('NHWC', 'HWIO', 'NHWC'))
    y = jnp.maximum(y, 0.0)
    pooled = jnp.mean(y, axis=(1, 2))          # [N, Cout]
    return pooled @ lin_w + lin_b


if __name__ == "__main__":
    # Small deterministic shapes: N=2, C=4, H=W=16, dims=32
    N, C, H, W = 2, 4, 16, 16
    Cout = 2 * C
    dims = 32

    key = jax.random.PRNGKey(0)
    k_x, k_conv, k_lw, k_lb = jax.random.split(key, 4)

    x = jax.random.normal(k_x, (N, C, H, W), dtype=jnp.float32)
    conv_w = jax.random.normal(k_conv, (3, 3, C, Cout), dtype=jnp.float32) * 0.1
    lin_w = jax.random.normal(k_lw, (Cout, dims), dtype=jnp.float32) * 0.1
    lin_b = jax.random.normal(k_lb, (dims,), dtype=jnp.float32) * 0.1

    out = jax.jit(qmm_forward)(x, conv_w, lin_w, lin_b)
    out = jax.block_until_ready(out)

    ref = qmm_reference(x, conv_w, lin_w, lin_b)
    assert out.shape == (N, dims), out.shape
    # Tolerance accounts for intentional bf16 MXU operands in the conv matmuls
    # (accumulation is f32); the f32 path matches to ~1e-3.
    assert jnp.allclose(out, ref, rtol=2e-2, atol=2e-2), \
        f"max abs diff {jnp.max(jnp.abs(out - ref))}"

    print("KERNEL_OK")
</pallas_src>

<mosaic_0001>
module attributes {stable_mosaic.version = 11 : i64} {
  func.func @qmm_fused_kernel(%arg0: i32, %arg1: memref<1x4x96x4xbf16, #tpu.memory_space<vmem>>, %arg2: memref<9x4x128xbf16, #tpu.memory_space<vmem>>, %arg3: memref<128x128xf32, #tpu.memory_space<vmem>>, %arg4: memref<1x128xf32, #tpu.memory_space<vmem>>, %arg5: memref<80x1xf32, #tpu.memory_space<vmem>>, %arg6: memref<1x1x128xf32, #tpu.memory_space<vmem>>) attributes {dimension_semantics = [#tpu.dimension_semantics<parallel>], iteration_bounds = array<i64: 2>, scalar_prefetch = 0 : i64, scratch_operands = 0 : i64, tpu.core_type = #tpu.core_type<tc>, window_params = [{transform_indices = @transform_0, window_bounds = array<i64: 1, 4, 96, 4>}, {pipeline_mode = #tpu.pipeline_mode<synchronous>, transform_indices = @transform_1, window_bounds = array<i64: 9, 4, 128>}, {pipeline_mode = #tpu.pipeline_mode<synchronous>, transform_indices = @transform_2, window_bounds = array<i64: 128, 128>}, {pipeline_mode = #tpu.pipeline_mode<synchronous>, transform_indices = @transform_3, window_bounds = array<i64: 1, 128>}, {pipeline_mode = #tpu.pipeline_mode<synchronous>, transform_indices = @transform_4, window_bounds = array<i64: 80, 1>}, {transform_indices = @transform_5, window_bounds = array<i64: 1, 1, 128>}]} {
    %cst = arith.constant 0.000000e+00 : f32
    %0 = vector.broadcast %cst : f32 to vector<1x128xf32>
    %cst_0 = arith.constant 0.000000e+00 : f32
    %1 = vector.broadcast %cst_0 : f32 to vector<80x128xf32>
    %c0 = arith.constant 0 : index
    %c0_1 = arith.constant 0 : index
    %c0_2 = arith.constant 0 : index
    %c0_3 = arith.constant 0 : index
    %2 = vector.load %arg1[%c0, %c0_1, %c0_2, %c0_3] : memref<1x4x96x4xbf16, #tpu.memory_space<vmem>>, vector<1x1x80x4xbf16>
    %3 = vector.shape_cast %2 : vector<1x1x80x4xbf16> to vector<80x4xbf16>
    %c0_4 = arith.constant 0 : index
    %c0_5 = arith.constant 0 : index
    %c0_6 = arith.constant 0 : index
    %4 = vector.load %arg2[%c0_4, %c0_5, %c0_6] : memref<9x4x128xbf16, #tpu.memory_space<vmem>>, vector<1x4x128xbf16>
    %5 = vector.shape_cast %4 : vector<1x4x128xbf16> to vector<4x128xbf16>
    %cst_7 = arith.constant dense<0.000000e+00> : vector<80x128xf32>
    %6 = tpu.matmul %3, %5, %cst_7 {dimension_numbers = #tpu.dot_dimension_numbers<[1], [0], [0], [1], [0, 0, 1, 1], [], []>} : vector<80x4xbf16>, vector<4x128xbf16>, vector<80x128xf32> -> vector<80x128xf32>
    %7 = arith.addf %1, %6 : vector<80x128xf32>
    %c0_8 = arith.constant 0 : index
    %c1 = arith.constant 1 : index
    %c0_9 = arith.constant 0 : index
    %c0_10 = arith.constant 0 : index
    %8 = vector.load %arg1[%c0_8, %c1, %c0_9, %c0_10] : memref<1x4x96x4xbf16, #tpu.memory_space<vmem>>, vector<1x1x80x4xbf16>
    %9 = vector.shape_cast %8 : vector<1x1x80x4xbf16> to vector<80x4xbf16>
    %c1_11 = arith.constant 1 : index
    %c0_12 = arith.constant 0 : index
    %c0_13 = arith.constant 0 : index
    %10 = vector.load %arg2[%c1_11, %c0_12, %c0_13] : memref<9x4x128xbf16, #tpu.memory_space<vmem>>, vector<1x4x128xbf16>
    %11 = vector.shape_cast %10 : vector<1x4x128xbf16> to vector<4x128xbf16>
    %cst_14 = arith.constant dense<0.000000e+00> : vector<80x128xf32>
    %12 = tpu.matmul %9, %11, %cst_14 {dimension_numbers = #tpu.dot_dimension_numbers<[1], [0], [0], [1], [0, 0, 1, 1], [], []>} : vector<80x4xbf16>, vector<4x128xbf16>, vector<80x128xf32> -> vector<80x128xf32>
    %13 = arith.addf %7, %12 : vector<80x128xf32>
    %c0_15 = arith.constant 0 : index
    %c0_16 = arith.constant 0 : index
    %c1_17 = arith.constant 1 : index
    %c0_18 = arith.constant 0 : index
    %14 = vector.load %arg1[%c0_15, %c0_16, %c1_17, %c0_18] : memref<1x4x96x4xbf16, #tpu.memory_space<vmem>>, vector<1x1x80x4xbf16>
    %15 = vector.shape_cast %14 : vector<1x1x80x4xbf16> to vector<80x4xbf16>
    %c2 = arith.constant 2 : index
    %c0_19 = arith.constant 0 : index
    %c0_20 = arith.constant 0 : index
    %16 = vector.load %arg2[%c2, %c0_19, %c0_20] : memref<9x4x128xbf16, #tpu.memory_space<vmem>>, vector<1x4x128xbf16>
    %17 = vector.shape_cast %16 : vector<1x4x128xbf16> to vector<4x128xbf16>
    %cst_21 = arith.constant dense<0.000000e+00> : vector<80x128xf32>
    %18 = tpu.matmul %15, %17, %cst_21 {dimension_numbers = #tpu.dot_dimension_numbers<[1], [0], [0], [1], [0, 0, 1, 1], [], []>} : vector<80x4xbf16>, vector<4x128xbf16>, vector<80x128xf32> -> vector<80x128xf32>
    %19 = arith.addf %13, %18 : vector<80x128xf32>
    %c0_22 = arith.constant 0 : index
    %c2_23 = arith.constant 2 : index
    %c0_24 = arith.constant 0 : index
    %c0_25 = arith.constant 0 : index
    %20 = vector.load %arg1[%c0_22, %c2_23, %c0_24, %c0_25] : memref<1x4x96x4xbf16, #tpu.memory_space<vmem>>, vector<1x1x80x4xbf16>
    %21 = vector.shape_cast %20 : vector<1x1x80x4xbf16> to vector<80x4xbf16>
    %c3 = arith.constant 3 : index
    %c0_26 = arith.constant 0 : index
    %c0_27 = arith.constant 0 : index
    %22 = vector.load %arg2[%c3, %c0_26, %c0_27] : memref<9x4x128xbf16, #tpu.memory_space<vmem>>, vector<1x4x128xbf16>
    %23 = vector.shape_cast %22 : vector<1x4x128xbf16> to vector<4x128xbf16>
    %cst_28 = arith.constant dense<0.000000e+00> : vector<80x128xf32>
    %24 = tpu.matmul %21, %23, %cst_28 {dimension_numbers = #tpu.dot_dimension_numbers<[1], [0], [0], [1], [0, 0, 1, 1], [], []>} : vector<80x4xbf16>, vector<4x128xbf16>, vector<80x128xf32> -> vector<80x128xf32>
    %25 = arith.addf %19, %24 : vector<80x128xf32>
    %c0_29 = arith.constant 0 : index
    %c3_30 = arith.constant 3 : index
    %c0_31 = arith.constant 0 : index
    %c0_32 = arith.constant 0 : index
    %26 = vector.load %arg1[%c0_29, %c3_30, %c0_31, %c0_32] : memref<1x4x96x4xbf16, #tpu.memory_space<vmem>>, vector<1x1x80x4xbf16>
    %27 = vector.shape_cast %26 : vector<1x1x80x4xbf16> to vector<80x4xbf16>
    %c4 = arith.constant 4 : index
    %c0_33 = arith.constant 0 : index
    %c0_34 = arith.constant 0 : index
    %28 = vector.load %arg2[%c4, %c0_33, %c0_34] : memref<9x4x128xbf16, #tpu.memory_space<vmem>>, vector<1x4x128xbf16>
    %29 = vector.shape_cast %28 : vector<1x4x128xbf16> to vector<4x128xbf16>
    %cst_35 = arith.constant dense<0.000000e+00> : vector<80x128xf32>
    %30 = tpu.matmul %27, %29, %cst_35 {dimension_numbers = #tpu.dot_dimension_numbers<[1], [0], [0], [1], [0, 0, 1, 1], [], []>} : vector<80x4xbf16>, vector<4x128xbf16>, vector<80x128xf32> -> vector<80x128xf32>
    %31 = arith.addf %25, %30 : vector<80x128xf32>
    %c0_36 = arith.constant 0 : index
    %c2_37 = arith.constant 2 : index
    %c1_38 = arith.constant 1 : index
    %c0_39 = arith.constant 0 : index
    %32 = vector.load %arg1[%c0_36, %c2_37, %c1_38, %c0_39] : memref<1x4x96x4xbf16, #tpu.memory_space<vmem>>, vector<1x1x80x4xbf16>
    %33 = vector.shape_cast %32 : vector<1x1x80x4xbf16> to vector<80x4xbf16>
    %c5 = arith.constant 5 : index
    %c0_40 = arith.constant 0 : index
    %c0_41 = arith.constant 0 : index
    %34 = vector.load %arg2[%c5, %c0_40, %c0_41] : memref<9x4x128xbf16, #tpu.memory_space<vmem>>, vector<1x4x128xbf16>
    %35 = vector.shape_cast %34 : vector<1x4x128xbf16> to vector<4x128xbf16>
    %cst_42 = arith.constant dense<0.000000e+00> : vector<80x128xf32>
    %36 = tpu.matmul %33, %35, %cst_42 {dimension_numbers = #tpu.dot_dimension_numbers<[1], [0], [0], [1], [0, 0, 1, 1], [], []>} : vector<80x4xbf16>, vector<4x128xbf16>, vector<80x128xf32> -> vector<80x128xf32>
    %37 = arith.addf %31, %36 : vector<80x128xf32>
    %c0_43 = arith.constant 0 : index
    %c0_44 = arith.constant 0 : index
    %c9 = arith.constant 9 : index
    %c0_45 = arith.constant 0 : index
    %38 = vector.load %arg1[%c0_43, %c0_44, %c9, %c0_45] : memref<1x4x96x4xbf16, #tpu.memory_space<vmem>>, vector<1x1x80x4xbf16>
    %39 = vector.shape_cast %38 : vector<1x1x80x4xbf16> to vector<80x4xbf16>
    %c6 = arith.constant 6 : index
    %c0_46 = arith.constant 0 : index
    %c0_47 = arith.constant 0 : index
    %40 = vector.load %arg2[%c6, %c0_46, %c0_47] : memref<9x4x128xbf16, #tpu.memory_space<vmem>>, vector<1x4x128xbf16>
    %41 = vector.shape_cast %40 : vector<1x4x128xbf16> to vector<4x128xbf16>
    %cst_48 = arith.constant dense<0.000000e+00> : vector<80x128xf32>
    %42 = tpu.matmul %39, %41, %cst_48 {dimension_numbers = #tpu.dot_dimension_numbers<[1], [0], [0], [1], [0, 0, 1, 1], [], []>} : vector<80x4xbf16>, vector<4x128xbf16>, vector<80x128xf32> -> vector<80x128xf32>
    %43 = arith.addf %37, %42 : vector<80x128xf32>
    %c0_49 = arith.constant 0 : index
    %c1_50 = arith.constant 1 : index
    %c9_51 = arith.constant 9 : index
    %c0_52 = arith.constant 0 : index
    %44 = vector.load %arg1[%c0_49, %c1_50, %c9_51, %c0_52] : memref<1x4x96x4xbf16, #tpu.memory_space<vmem>>, vector<1x1x80x4xbf16>
    %45 = vector.shape_cast %44 : vector<1x1x80x4xbf16> to vector<80x4xbf16>
    %c7 = arith.constant 7 : index
    %c0_53 = arith.constant 0 : index
    %c0_54 = arith.constant 0 : index
    %46 = vector.load %arg2[%c7, %c0_53, %c0_54] : memref<9x4x128xbf16, #tpu.memory_space<vmem>>, vector<1x4x128xbf16>
    %47 = vector.shape_cast %46 : vector<1x4x128xbf16> to vector<4x128xbf16>
    %cst_55 = arith.constant dense<0.000000e+00> : vector<80x128xf32>
    %48 = tpu.matmul %45, %47, %cst_55 {dimension_numbers = #tpu.dot_dimension_numbers<[1], [0], [0], [1], [0, 0, 1, 1], [], []>} : vector<80x4xbf16>, vector<4x128xbf16>, vector<80x128xf32> -> vector<80x128xf32>
    %49 = arith.addf %43, %48 : vector<80x128xf32>
    %c0_56 = arith.constant 0 : index
    %c0_57 = arith.constant 0 : index
    %c10 = arith.constant 10 : index
    %c0_58 = arith.constant 0 : index
    %50 = vector.load %arg1[%c0_56, %c0_57, %c10, %c0_58] : memref<1x4x96x4xbf16, #tpu.memory_space<vmem>>, vector<1x1x80x4xbf16>
    %51 = vector.shape_cast %50 : vector<1x1x80x4xbf16> to vector<80x4xbf16>
    %c8 = arith.constant 8 : index
    %c0_59 = arith.constant 0 : index
    %c0_60 = arith.constant 0 : index
    %52 = vector.load %arg2[%c8, %c0_59, %c0_60] : memref<9x4x128xbf16, #tpu.memory_space<vmem>>, vector<1x4x128xbf16>
    %53 = vector.shape_cast %52 : vector<1x4x128xbf16> to vector<4x128xbf16>
    %cst_61 = arith.constant dense<0.000000e+00> : vector<80x128xf32>
    %54 = tpu.matmul %51, %53, %cst_61 {dimension_numbers = #tpu.dot_dimension_numbers<[1], [0], [0], [1], [0, 0, 1, 1], [], []>} : vector<80x4xbf16>, vector<4x128xbf16>, vector<80x128xf32> -> vector<80x128xf32>
    %55 = arith.addf %49, %54 : vector<80x128xf32>
    %cst_62 = arith.constant 0.000000e+00 : f32
    %56 = vector.broadcast %cst_62 : f32 to vector<80x128xf32>
    %57 = arith.maximumf %55, %56 : vector<80x128xf32>
    %c0_63 = arith.constant 0 : index
    %c0_64 = arith.constant 0 : index
    %58 = vector.load %arg5[%c0_63, %c0_64] : memref<80x1xf32, #tpu.memory_space<vmem>>, vector<80x1xf32>
    %59 = vector.broadcast %58 : vector<80x1xf32> to vector<80x128xf32>
    %60 = arith.mulf %57, %59 : vector<80x128xf32>
    %cst_65 = arith.constant dense<0.000000e+00> : vector<128xf32>
    %61 = vector.multi_reduction <add>, %60, %cst_65 [0] : vector<80x128xf32> to vector<128xf32>
    %62 = vector.shape_cast %61 : vector<128xf32> to vector<1x128xf32>
    %63 = arith.addf %0, %62 : vector<1x128xf32>
    %c0_66 = arith.constant 0 : index
    %c0_67 = arith.constant 0 : index
    %64 = vector.load %arg3[%c0_66, %c0_67] : memref<128x128xf32, #tpu.memory_space<vmem>>, vector<128x128xf32>
    %cst_68 = arith.constant dense<0.000000e+00> : vector<1x128xf32>
    %65 = tpu.matmul %63, %64, %cst_68 {dimension_numbers = #tpu.dot_dimension_numbers<[1], [0], [0], [1], [0, 0, 1, 1], [], []>} : vector<1x128xf32>, vector<128x128xf32>, vector<1x128xf32> -> vector<1x128xf32>
    %c0_69 = arith.constant 0 : index
    %c0_70 = arith.constant 0 : index
    %66 = vector.load %arg4[%c0_69, %c0_70] : memref<1x128xf32, #tpu.memory_space<vmem>>, vector<1x128xf32>
    %67 = arith.addf %65, %66 : vector<1x128xf32>
    %c0_71 = arith.constant 0 : index
    %c0_72 = arith.constant 0 : index
    %c0_73 = arith.constant 0 : index
    %68 = vector.load %arg6[%c0_71, %c0_72, %c0_73] : memref<1x1x128xf32, #tpu.memory_space<vmem>>, vector<1x1x128xf32>
    %69 = vector.shape_cast %68 : vector<1x1x128xf32> to vector<1x128xf32>
    %70 = vector.shape_cast %67 : vector<1x128xf32> to vector<1x1x128xf32>
    tpu.vector_store %arg6[%c0_71, %c0_72, %c0_73], %70 {strides = array<i32>} : memref<1x1x128xf32, #tpu.memory_space<vmem>>, vector<1x1x128xf32>,
    return
  }
  func.func @transform_0(%arg0: i32) -> (i32, i32, i32, i32) {
    %c0_i32 = arith.constant 0 : i32
    %c0_i32_0 = arith.constant 0 : i32
    %c0_i32_1 = arith.constant 0 : i32
    %c0_i32_2 = arith.constant 0 : i32
    return %arg0, %c0_i32, %c0_i32_0, %c0_i32_1 : i32, i32, i32, i32
  }
  func.func @transform_1(%arg0: i32) -> (i32, i32, i32) {
    %c0_i32 = arith.constant 0 : i32
    %c0_i32_0 = arith.constant 0 : i32
    %c0_i32_1 = arith.constant 0 : i32
    %c0_i32_2 = arith.constant 0 : i32
    return %c0_i32, %c0_i32_0, %c0_i32_1 : i32, i32, i32
  }
  func.func @transform_2(%arg0: i32) -> (i32, i32) {
    %c0_i32 = arith.constant 0 : i32
    %c0_i32_0 = arith.constant 0 : i32
    %c0_i32_1 = arith.constant 0 : i32
    return %c0_i32, %c0_i32_0 : i32, i32
  }
  func.func @transform_3(%arg0: i32) -> (i32, i32) {
    %c0_i32 = arith.constant 0 : i32
    %c0_i32_0 = arith.constant 0 : i32
    %c0_i32_1 = arith.constant 0 : i32
    return %c0_i32, %c0_i32_0 : i32, i32
  }
  func.func @transform_4(%arg0: i32) -> (i32, i32) {
    %c0_i32 = arith.constant 0 : i32
    %c0_i32_0 = arith.constant 0 : i32
    %c0_i32_1 = arith.constant 0 : i32
    return %c0_i32, %c0_i32_0 : i32, i32
  }
  func.func @transform_5(%arg0: i32) -> (i32, i32, i32) {
    %c0_i32 = arith.constant 0 : i32
    %c0_i32_0 = arith.constant 0 : i32
    %c0_i32_1 = arith.constant 0 : i32
    return %arg0, %c0_i32, %c0_i32_0 : i32, i32, i32
  }
}

</mosaic_0001>

<bundles_post_ra>
// kernel: qmm_forward.1
= control target key start
LH: loop header
LB: loop body
LE: loop exit
PB: predicated region body
PF: predicated region fallthrough
CT: control target
= control target key end

     0   :  { %10 = vsyncpa [#allocation3], 0  ;;  %s3247_s0 = inlined_call_operand.vmem [shape: bf16[2,4,96,4], index: 0, kind: input, shape index: {}]   ;;  %s3248_s1 = inlined_call_operand.vmem [shape: bf16[9,4,128], index: 1, kind: input, shape index: {}]   ;;  %s3249_s2 = inlined_call_operand.vmem [shape: f32[128,128], index: 2, kind: input, shape index: {}]   ;;  %s3250_s3 = inlined_call_operand.vmem [shape: f32[1,128], index: 3, kind: input, shape index: {}]   ;;  %s3251_s4 = inlined_call_operand.vmem [shape: f32[80,1], index: 4, kind: input, shape index: {}]   ;;  %s3252_s5 = inlined_call_operand.hbm [shape: f32[2,1,128], index: 5, kind: output, shape index: {}]  }
   0x1   :  { %12 = vsyncpa [#allocation3 + $0x1], 0  ;;  %s2703_s18 = smov 0   ;;  %s2705_s19 = smov 0  }
   0x2   :  { %s2707_s20 = smov 0   ;;  %s2709_s21 = smov 0  }
   0x3 LB: > { %s2724_s22 = sadd.s32 4294967295, %s2666_s21   ;;  %s1875_s23 = sadd.s32 4294967294, %s2666_s21   ;;  %s2666_s21 = sphi %s2709_s21, %s3258_s21   ;;  %s2662_s20 = sphi %s2707_s20, %s3257_s20   ;;  %s2658_s19 = sphi %s2705_s19, %s3256_s19   ;;  %s2654_s18 = sphi %s2703_s18, %s3255_s18  }
   0x4   : > { %s2728_s24 = sadd.s32 1, %s2666_s21   ;;  %s135_s25 = sadd.s32 1, %s2662_s20 }
   0x5   : > { %s132_s26 = ssub.s32 %s2666_s21, %s2728_s24  ;;  %p145_p0 = scmp.ne.s32.totalorder %s2662_s20, %s2658_s19 }
   0x6   : > { %p133_p1 = scmp.eq.s32.totalorder %s132_s26, 0  ;;  %p146_p2 = scmp.eq.s32.totalorder %s2724_s22, 1 }
   0x7   : > { %p151_p3 = scmp.ne.s32.totalorder %s2658_s19, %s2654_s18  ;;  %p152_p4 = scmp.eq.s32.totalorder %s1875_s23, 1 }
   0x8   : > { %s2739_s27 = scalar_select %p133_p1, %s2662_s20, %s135_s25  }
   0x9   : > { %p2741_p5 = por %p146_p2, %p145_p0  ;;  %p2745_p6 = por %p152_p4, %p151_p3 }
   0xa   : > { %p1878_p7 = scmp.ge.s32.totalorder %s2666_s21, 1  ;;  %p190_p8 = scmp.lt.s32.totalorder %s2666_s21, 3 }
   0xc   : > { %p191_p9 = pnand %p1878_p7, %p190_p8 }
   0xd   : > { %v1890_v0 = vld [vmem:[%s3248_s1 + $0x2] sm:$0x3] (!%p191_p9)  ;;  %vm288_vm0 = vcmask (!%p191_p9), 1041408   ;;  %p217_p10 = scmp.lt.s32.totalorder (!%p191_p9), %s2724_s22, 1  ;;  %v2668_v1 = vmov (!%p191_p9), 0.0   ;;  %vm2669_vm1 = vmmov (!%p191_p9), 0  }
   0xe   : > { %194 = sbr.rel (%p191_p9) target bundleno = 665 (0x299), region = 40  ;;  %2361 = vmatprep.subr.bf16.mxu1 (!%p191_p9), %v2668_v1  ;;  %2104 = vmatprep.subr.bf16.mxu0 (!%p191_p9), %v2668_v1  ;;  %v290_v2 = vsel (!%p191_p9), %vm288_vm0, %v1890_v0, 0  ;;  %v1954_v3 = vld [vmem:[%s3248_s1 + $0x8] sm:$0x3] (!%p191_p9)  ;;  %v233_v4 = vld [vmem:[%s3248_s1] sm:$0x3] (!%p191_p9) }
   0xf   : > { %2362 = vmatpush3.bf16.msra.mxu1 (!%p191_p9), %v290_v2  ;;  %2105 = vmatpush3.bf16.msra.mxu0 (!%p191_p9), %v290_v2  ;;  %vm272_vm2 = vcmask (!%p191_p9), 31744   ;;  %v2778_v6 = vsel (!%p191_p9), %vm288_vm0, %v1954_v3, 0  ;;  %v406_v8 = vsel (!%p191_p9), %vm288_vm0, %v233_v4, 0  ;;  %v1976_v9 = vld [vmem:[%s3248_s1 + $0xa] sm:$0x3] (!%p191_p9)  ;;  %vm1510_vm4 = vcmask (!%p191_p9), 1046528  }
  0x10   : > { %2106 = vmatprep.mubr.msk.bf16.mxu0 (!%p191_p9), %vm2669_vm1, %v2668_v1  ;;  %2110 = vmatprep.mubr.msk.bf16.mxu1 (!%p191_p9), %vm2669_vm1, %v2668_v1  ;;  %v1047_v14 = vsel (!%p191_p9), %vm288_vm0, %v1976_v9, 0  ;;  %vm522_vm3 = vsmask.f32 (!%p191_p9), 7424  ;;  %v1988_v23 = vld [vmem:[%s3248_s1 + $0xc] sm:$0x3] (!%p191_p9)  ;;  %s215_s23 = sand.u32 (!%p191_p9), 1, %s2658_s19  }
  0x11   : > { %2126 = vmatprep.subr.bf16.mxu1 (!%p191_p9), %v2668_v1  ;;  %2192 = vmatprep.subr.bf16.mxu0 (!%p191_p9), %v2668_v1  ;;  %v1911_v24 = vld [vmem:[%s3248_s1 + $0x4] sm:$0x3] (!%p191_p9)  ;;  %v1233_v30 = vsel (!%p191_p9), %vm288_vm0, %v1988_v23, 0  ;;  %s2030_s30 = sshll.u32 (!%p191_p9), %s2724_s22, 4  ;;  %s1808_s10 = scalar_lea.sflag (!%p191_p9), [#allocation3], %s215_s23 }
  0x12   : > { %v583_v31 = vsel (!%p191_p9), %vm288_vm0, %v1911_v24, 0  ;;  %s3205_s9 = scalar_lea.hbm (!%p191_p9), %s3252_s5, %s2030_s30 }
  0x15   : > { %s218_s7 = scalar_select %p217_p10, %s2724_s22, 1 }
  0x16   : > { %s2672_s22 = smov [#allocation2]  }
  0x17   : > { %s2513_s8 = smul.u32 192, %s218_s7  ;;  %s2608_s12 = sshll.u32 %s2672_s22, 4  ;;  %s2609_s12 = int_to_ptr.vmem [resolvable:$false] %s2608_s12 }
  0x18   : > { %s2610_s13 = scalar_lea.vmem %s2609_s12, 32 }
  0x19   : > { %s2774_s15 = scalar_lea.vmem %s3247_s0, %s2513_s8 }
  0x1a   : > { %v2559_v5 = vld [vmem:[%s2774_s15 + $0x30] sm:$0xff]   ;;  %v2560_v7 = vld [vmem:[%s2774_s15 + $0x38] sm:$0xff]   ;;  %v2561_v10 = vld [vmem:[%s2774_s15 + $0x40] sm:$0xff]  }
  0x1b   : > { %2107 = vmatmul.mubr.msk.bf16.vlgmr.msra.gmra.mrb[0].mxu0 %vm272_vm2, %v2559_v5  ;;  %2111 = vmatmul.mubr.msk.bf16.vlgmr.msra.gmra.mrb[0].mxu1 %vm272_vm2, %v2560_v7  ;;  %v2562_v11 = vld [vmem:[%s2774_s15 + $0x90] sm:$0xff]   ;;  %v2564_v12 = vld [vmem:[%s2774_s15 + $0x60] sm:$0xff]   ;;  %v2565_v13 = vld [vmem:[%s2774_s15 + $0x68] sm:$0xff]  }
  0x1c   : > { %2193 = vmatpush3.bf16.msra.mxu0 %v2778_v6  ;;  %2127 = vmatpush3.bf16.msra.mxu1 %v406_v8  ;;  %v990_v15 = vshll.u32 %v2564_v12, 16  ;;  %v988_v16 = vshrl.u32 %v2564_v12, 16  ;;  %v995_v18 = vshll.u32 %v2565_v13, 16  ;;  %v2563_v19 = vld [vmem:[%s2774_s15 + $0x48] sm:$0xff]   ;;  %v2567_v22 = vld [vmem:[%s2774_s15 + $0x70] sm:$0xff]   ;;  %v2815_v25 = vld [vmem:[%s2774_s15 + $0x78] sm:$0xff]  }
  0x1d   : > { %2114 = vmatprep.mubr.msk.bf16.mxu1 %vm2669_vm1, %v2668_v1  ;;  %2194 = vmatprep.mubr.msk.bf16.mxu0 %vm2669_vm1, %v2668_v1  ;;  %v2818_v26 = vld [vmem:[%s2774_s15 + $0x80] sm:$0xff]   ;;  %v999_v28 = vshrl.u32 %v2565_v13, 16  ;;  %v1003_v29 = vshll.u32 %v2567_v22, 16  ;;  %v1011_v32 = vshll.u32 %v2815_v25, 16  ;;  %v2566_v35 = vld [vmem:[%s2774_s15 + $0x50] sm:$0xff]   ;;  %v1007_v38 = vshrl.u32 %v2567_v22, 16 }
  0x1e   : > { %2214 = vmatprep.subr.bf16.mxu0 %v2668_v1  ;;  %2148 = vmatprep.subr.bf16.mxu1 %v2668_v1  ;;  %v992_v17 = vrot.slane %v990_v15, 1  ;;  %v997_v21 = vrot.slane %v995_v18, 1  ;;  %v1019_v33 = vshll.u32 %v2818_v26, 16  ;;  %v2830_v34 = vld [vmem:[%s2774_s15 + $0x88] ss:$0 sps:$4 sm:$0x11]  }
  0x1f   : > { %v1005_v37 = vrot.slane %v1003_v29, 1  ;;  %v1015_v39 = vshrl.u32 %v2815_v25, 16  ;;  %v2837_v40 = vrot.slane %v1011_v32, 1  ;;  %v1023_v41 = vshrl.u32 %v2818_v26, 16  ;;  %v2841_v42 = vld [vmem:[%s2774_s15 + $0x1c] sm:$0xff]   ;;  %v2582_v43 = vld [vmem:[%s2774_s15 + $0x10] sm:$0xff]  }
  0x20   : > { %v993_v20 = vor.u32 %v992_v17, %v988_v16  ;;  %v1001_v36 = vor.u32 %v999_v28, %v997_v21  ;;  %v2844_v44 = vrot.slane %v1019_v33, 1  ;;  %v1027_v45 = vshll.u32 %v2830_v34, 16  ;;  %v2851_v49 = vld [vmem:[%s2774_s15 + $0x24] sm:$0xff]   ;;  %v2584_v50 = vld [vmem:[%s2774_s15 + $0x18] sm:$0xff]   ;;  %v2592_v33 = vld [vmem:[%s2774_s15 + $0x4c] sm:$0xff]  }
  0x21   : > { %v1197_v47 = vshll.u32 %v2841_v42, 16  ;;  %v539_v48 = vshll.u32 %v2582_v43, 16  ;;  %v1201_v51 = vshrl.u32 %v2841_v42, 16  ;;  %v543_v52 = vshrl.u32 %v2582_v43, 16  ;;  %v2568_v53 = vld [vmem:[%s2774_s15] sm:$0xff]   ;;  %v2587_v2 = vld [vmem:[%s2774_s15 + $0x34] sm:$0xff]  }
  0x22   : > { %v998_v27 = vsel %vm522_vm3, %v993_v20, %v997_v21  ;;  %v1006_v46 = vsel %vm522_vm3, %v1001_v36, %v1005_v37  ;;  %v1205_v56 = vshll.u32 %v2851_v49, 16  ;;  %v2586_v57 = vld [vmem:[%s2774_s15 + $0x20] sm:$0xff]   ;;  %v547_v58 = vshll.u32 %v2584_v50, 16  ;;  %v2866_v59 = vld [vmem:[%s2774_s15 + $0x2c] ss:$0 sps:$4 sm:$0x11]  }
  0x23   : > { %2195 = vmatmul.mubr.msk.bf16.vlgmr.msra.gmra.mrb[4].mxu0 %vm272_vm2, %v2562_v11  ;;  %2115 = vmatmul.mubr.msk.bf16.gmra.mrb[4].mxu1 %vm272_vm2, %v2561_v10  ;;  %v2858_v54 = vrot.slane %v1197_v47, 1  ;;  %v2860_v55 = vrot.slane %v539_v48, 1  ;;  %v1209_v60 = vshrl.u32 %v2851_v49, 16  ;;  %v551_v61 = vshrl.u32 %v2584_v50, 16  ;;  %v2588_v8 = vld [vmem:[%s2774_s15 + $0x3c] sm:$0xff]   ;;  %v2590_v23 = vld [vmem:[%s2774_s15 + $0x44] sm:$0xff]  }
  0x24   : > { %2215 = vmatpush3.bf16.msra.mxu0 %v1047_v14  ;;  %2118 = vmatprep.mubr.msk.bf16.mxu1 %vm2669_vm1, %v2668_v1  ;;  %v1009_v62 = vor.u32 %v1007_v38, %v1005_v37  ;;  %v1207_v0 = vrot.slane %v1205_v56, 1  ;;  %v549_v4 = vrot.slane %v547_v58, 1  ;;  %v1213_v5 = vshll.u32 %v2866_v59, 16  ;;  %v1132_v28 = vld [vmem:[%s2774_s15 + $0x4] sm:$0xf]  ;;  %v2909_v25 = vld [vmem:[%s2774_s15 + $0xc] sm:$0xff]  }
  0x25   : > { %2216 = vmatprep.mubr.msk.bf16.mxu0 %vm2669_vm1, %v2668_v1  ;;  %2236 = vmatprep.subr.bf16.mxu0 %v2668_v1  ;;  %v1203_v63 = vor.u32 %v1201_v51, %v2858_v54  ;;  %v545_v3 = vor.u32 %v543_v52, %v2860_v55  ;;  %v555_v7 = vshll.u32 %v2586_v57, 16  ;;  %v1360_v16 = vshrl.u32 %v2587_v2, 16  ;;  %v1133_v29 = vld [vmem:[%s2774_s15 + $0x8] sm:$0xf] }
  0x26   : > { %v1211_v10 = vor.u32 %v1209_v60, %v1207_v0  ;;  %v1215_v12 = vrot.slane %v1213_v5, 1  ;;  %v553_v13 = vor.u32 %v551_v61, %v549_v4  ;;  %v1014_v15 = vsel %vm522_vm3, %v1009_v62, %v2837_v40  ;;  %v2925_v60 = vld [vmem:[%s2774_s15 + $0x14] sm:$0xff]  }
  0x27   : > { %v2877_v9 = vsel %vm522_vm3, %v1203_v63, %v1207_v0  ;;  %v2880_v11 = vsel %vm522_vm3, %v545_v3, %v549_v4  ;;  %v557_v14 = vrot.slane %v555_v7, 1  ;;  %v1362_v17 = vshll.u32 %v2587_v2, 16  ;;  %v2596_v63 = vld [vmem:[%s2774_s15 + $0x5c] ss:$0 sps:$4 sm:$0x11]   ;;  %v2572_v4 = vld [vmem:[%s2774_s15 + $0x10] sm:$0xff]  }
  0x28   : > { %v1367_v18 = vshll.u32 %v2588_v8, 16  ;;  %v2889_v20 = vsel %vm522_vm3, %v1211_v10, %v1215_v12  ;;  %v559_v22 = vshrl.u32 %v2586_v57, 16  ;;  %v1371_v24 = vshrl.u32 %v2588_v8, 16  ;;  %v1504_v3 = vld [vmem:[%s2774_s15 + $0x4] sm:$0xe] }
  0x29   : > { %v2892_v21 = vsel %vm522_vm3, %v553_v13, %v557_v14  ;;  %v1375_v37 = vshll.u32 %v2590_v23, 16  ;;  %v1379_v38 = vshrl.u32 %v2590_v23, 16  ;;  %v1383_v48 = vshll.u32 %v2592_v33, 16 }
  0x2a   : > { %v1369_v32 = vrot.slane %v1367_v18, 1  ;;  %v561_v36 = vor.u32 %v559_v22, %v557_v14  ;;  %v1029_v50 = vrot.slane %v1027_v45, 1  ;;  %v1387_v56 = vshrl.u32 %v2592_v33, 16  ;;  %v2579_v33 = vld [vmem:[%s2774_s15] sm:$0xff]  }
  0x2b   : > { %2119 = vmatmul.mubr.msk.bf16.gmra.mrb[8].mxu1 %vm272_vm2, %v2563_v19  ;;  %v2589_v19 = vld [vmem:[%s2774_s15 + $0x28] ss:$0 sps:$4 sm:$0x11]   ;;  %v1377_v51 = vrot.slane %v1375_v37, 1  ;;  %v1385_v52 = vrot.slane %v1383_v48, 1  ;;  %v1989_v57 = vcombine.low %v1132_v28, %v1133_v29  ;;  %v1399_v7 = vshll.u32 %v2596_v63, 16 }
  0x2c   : > { %2122 = vmatprep.mubr.msk.bf16.mxu1 %vm2669_vm1, %v2668_v1  ;;  %v1373_v47 = vor.u32 %v1371_v24, %v1369_v32  ;;  %v2024_v8 = vcombine.low %v1504_v3, %v1133_v29  ;;  %v1512_v10 = vrot.slane %v2909_v25, 1  ;;  %v1025_v12 = vor.u32 %v1023_v41, %v2844_v44  ;;  %v2577_v48 = vld [vmem:[%s2774_s15 + $0x20] sm:$0xff]  }
  0x2d   : > { %v1381_v34 = vor.u32 %v1379_v38, %v1377_v51  ;;  %v1389_v61 = vor.u32 %v1387_v56, %v1385_v52  ;;  %v1176_v13 = vshll.u32 %v1989_v57, 16  ;;  %v1514_v14 = vrot.slane %v2925_v60, 1 }
  0x2e   : > { %v2919_v58 = vsel %vm522_vm3, %v1373_v47, %v1377_v51  ;;  %v1511_v18 = vrot.slane %v2024_v8, 1  ;;  %v1516_v22 = vrot.slane %v2841_v42, 1  ;;  %v1518_v26 = vrot.slane %v2851_v49, 1  ;;  %v1636_v8 = vld [vmem:[%s3251_s4 + $0x18] sm:$0xff] }
  0x2f   : > { %2217 = vmatmul.mubr.msk.bf16.vlgmr.msra.gmra.mrb[4].mxu0 %vm272_vm2, %v998_v27  ;;  %v2570_v27 = vld [vmem:[%s2774_s15 + $0x8] sm:$0xff]   ;;  %v2931_v2 = vsel %vm522_vm3, %v1381_v34, %v1385_v52  ;;  %v1520_v23 = vrot.slane %v2866_v59, 1  ;;  %v1174_v24 = vshrl.u32 %v1989_v57, 16  ;;  %v1030_v42 = vsel %vm522_vm3, %v1025_v12, %v1029_v50  ;;  %v2574_v59 = vld [vmem:[%s2774_s15 + $0x18] sm:$0xff]   ;;  %v2023_v12 = vld [vmem:[%s3248_s1 + $0x10] sm:$0x3] }
  0x30   : > { %2237 = vmatpush3.bf16.msra.mxu0 %v1233_v30  ;;  %2220 = vmatprep.mubr.msk.bf16.mxu0 %vm2669_vm1, %v2668_v1  ;;  %v1364_v30 = vrot.slane %v1362_v17, 1  ;;  %v1401_v17 = vrot.slane %v1399_v7, 1  ;;  %v2962_v28 = vsel %vm1510_vm4, %v1516_v22, %v1518_v26  ;;  %v1178_v49 = vrot.slane %v1176_v13, 1  ;;  %v1635_v7 = vld [vmem:[%s3251_s4 + $0x10] sm:$0xff] }
  0x31   : > { %2258 = vmatprep.subr.bf16.mxu0 %v2668_v1  ;;  %v1181_v29 = vshll.u32 %v2909_v25, 16  ;;  %v1185_v37 = vshrl.u32 %v2909_v25, 16  ;;  %v1189_v38 = vshll.u32 %v2925_v60, 16  ;;  %v526_v47 = vshll.u32 %v2579_v33, 16 }
  0x32   : > { %v1365_v43 = vor.u32 %v1364_v30, %v1360_v16  ;;  %v2968_v30 = vsel %vm1510_vm4, %v1518_v26, %v1520_v23  ;;  %v524_v52 = vshrl.u32 %v2579_v33, 16  ;;  %v1193_v57 = vshrl.u32 %v2925_v60, 16  ;;  %v1719_v23 = vld [vmem:[%s3249_s2] sm:$0xff] }
  0x33   : > { %2123 = vmatmul.mubr.msk.bf16.gmra.mrb[12].mxu1 %vm272_vm2, %v2566_v35  ;;  %v1017_v35 = vor.u32 %v1015_v39, %v2837_v40  ;;  %v1191_v51 = vrot.slane %v1189_v38, 1  ;;  %v528_v25 = vrot.slane %v526_v47, 1  ;;  %v1538_v13 = vsel %vm288_vm0, %v2023_v12, 0  ;;  %v1729_v38 = vld [vmem:[%s3249_s2 + $0x50] sm:$0xff]  ;;  %v1731_v47 = vld [vmem:[%s3249_s2 + $0x60] sm:$0xff] }
  0x34   : > { %2128 = vmatprep.mubr.msk.bf16.mxu1 %vm2669_vm1, %v2668_v1  ;;  %v2912_v39 = vsel %vm522_vm3, %v1365_v43, %v1369_v32  ;;  %v1179_v32 = vor.u32 %v1178_v49, %v1174_v24  ;;  %v1720_v24 = vld [vmem:[%s3249_s2 + $0x8] sm:$0xff] }
  0x35   : > { %v1022_v45 = vsel %vm522_vm3, %v1017_v35, %v2844_v44  ;;  %v2955_v44 = vsel %vm1510_vm4, %v1511_v18, %v1512_v10  ;;  %v2011_v35 = vld [vmem:[%s3248_s1 + $0xe] sm:$0x3]  ;;  %v529_v34 = vor.u32 %v528_v25, %v524_v52  ;;  %v1734_v52 = vld [vmem:[%s3249_s2 + $0x78] sm:$0xff] }
  0x36   : > { %v1419_v43 = vsel %vm288_vm0, %v2011_v35, 0  ;;  %v2602_v18 = vld [vmem:[%s2774_s15 + $0xa8] sm:$0xff]   ;;  %v1727_v35 = vld [vmem:[%s3249_s2 + $0x40] sm:$0xff] }
  0x37   : > { %2221 = vmatmul.mubr.msk.bf16.gmra.mrb[8].mxu0 %vm272_vm2, %v1006_v46 }
  0x38   : > { %2224 = vmatprep.mubr.msk.bf16.mxu0 %vm2669_vm1, %v2668_v1 }
  0x3b   : > { %2129 = vmatmul.mubr.msk.bf16.vlgmr.msra.gmra.mrb[16].mxu1 %vm272_vm2, %v2568_v53  ;;  %v2594_v53 = vld [vmem:[%s2774_s15 + $0x54] sm:$0xff]  }
  0x3c   : > { %2149 = vmatpush3.bf16.msra.mxu1 %v583_v31  ;;  %2132 = vmatprep.mubr.msk.bf16.mxu1 %vm2669_vm1, %v2668_v1  ;;  %v563_v31 = vshll.u32 %v2589_v19, 16  ;;  %v1391_v62 = vshll.u32 %v2594_v53, 16  ;;  %v1395_v0 = vshrl.u32 %v2594_v53, 16  ;;  %v2947_v19 = vsel %vm1510_vm4, %v1512_v10, %v1514_v14  ;;  %v1638_v10 = vld [vmem:[%s3251_s4 + $0x28] sm:$0xff] }
  0x3d   : > { %2170 = vmatprep.subr.bf16.mxu1 %v2668_v1 }
  0x3e   : > { %v565_v46 = vrot.slane %v563_v31, 1  ;;  %v1393_v5 = vrot.slane %v1391_v62, 1  ;;  %v1183_v31 = vrot.slane %v1181_v29, 1  ;;  %v1195_v62 = vor.u32 %v1193_v57, %v1191_v51  ;;  %v1723_v29 = vld [vmem:[%s3249_s2 + $0x20] sm:$0xff] }
  0x3f   : > { %2225 = vmatmul.mubr.msk.bf16.gmra.mrb[12].mxu0 %vm272_vm2, %v1014_v15 }
  0x40   : > { %2228 = vmatprep.mubr.msk.bf16.mxu0 %vm2669_vm1, %v2668_v1  ;;  %v2915_v40 = vsel %vm522_vm3, %v561_v36, %v565_v46  ;;  %v2944_v15 = vsel %vm522_vm3, %v1389_v61, %v1393_v5  ;;  %v1397_v16 = vor.u32 %v1395_v0, %v1393_v5  ;;  %v1184_v36 = vsel %vm522_vm3, %v1179_v32, %v1183_v31  ;;  %v2580_v46 = vld [vmem:[%s2774_s15 + $0x8] sm:$0xff]   ;;  %v1933_v61 = vld [vmem:[%s3248_s1 + $0x6] sm:$0x3]  ;;  %v1725_v32 = vld [vmem:[%s3249_s2 + $0x30] sm:$0xff] }
  0x41   : > { %v1187_v50 = vor.u32 %v1185_v37, %v1183_v31  ;;  %v531_v53 = vshll.u32 %v2580_v46, 16  ;;  %v535_v0 = vshrl.u32 %v2580_v46, 16  ;;  %v722_v60 = vsel %vm288_vm0, %v1933_v61, 0  ;;  %v1726_v31 = vld [vmem:[%s3249_s2 + $0x38] sm:$0xff] }
  0x42   : > { %v2952_v41 = vsel %vm522_vm3, %v1397_v16, %v1401_v17  ;;  %v1200_v3 = vsel %vm522_vm3, %v1195_v62, %v2858_v54  ;;  %v1633_v54 = vld [vmem:[%s3251_s4] sm:$0xff]  ;;  %v1642_v16 = vld [vmem:[%s3251_s4 + $0x48] sm:$0xff]  ;;  %v2347_v33 = vpack.c.bf16 %v1726_v31, %v1725_v32 }
  0x43   : > { %2133 = vmatmul.mubr.msk.bf16.gmra.mrb[0].mxu1 %vm272_vm2, %v2570_v27  ;;  %v2959_v27 = vsel %vm1510_vm4, %v1514_v14, %v1516_v22  ;;  %v1192_v56 = vsel %vm522_vm3, %v1187_v50, %v1191_v51  ;;  %v1640_v14 = vld [vmem:[%s3251_s4 + $0x38] sm:$0xff]  ;;  %v2601_v17 = vld [vmem:[%s2774_s15 + $0xa0] sm:$0xff]   ;;  %v1733_v51 = vld [vmem:[%s3249_s2 + $0x70] sm:$0xff] }
  0x44   : > { %2136 = vmatprep.mubr.msk.bf16.mxu1 %vm2669_vm1, %v2668_v1  ;;  %v2359_v25 = vpack.c.bf16 %v1734_v52, %v1733_v51 }
  0x47   : > { %2229 = vmatmul.mubr.msk.bf16.gmra.mrb[16].mxu0 %vm272_vm2, %v1022_v45  ;;  %v533_v45 = vrot.slane %v531_v53, 1 }
  0x48   : > { %2232 = vmatprep.mubr.msk.bf16.mxu0 %vm2669_vm1, %v2668_v1 }
  0x49   : > { %v534_v63 = vsel %vm522_vm3, %v529_v34, %v533_v45 }
  0x4b   : > { %2137 = vmatmul.mubr.msk.bf16.gmra.mrb[4].mxu1 %vm272_vm2, %v2572_v4  ;;  %v537_v4 = vor.u32 %v535_v0, %v533_v45 }
  0x4c   : > { %2140 = vmatprep.mubr.msk.bf16.mxu1 %vm2669_vm1, %v2668_v1 }
  0x4d   : > { %v542_v5 = vsel %vm522_vm3, %v537_v4, %v2860_v55  ;;  %v2670_v55 = vmov 0  }
  0x4e   : > { %2557 = vset.pattern.permute.xlu0 %v2670_v55  ;;  %2558 = vset.pattern.permute.xlu1 %v2670_v55 }
  0x4f   : > { %2233 = vmatmul.mubr.msk.bf16.gmra.mrb[20].mxu0 %vm272_vm2, %v1030_v42  ;;  %1645 = vperm.xlu0 %2557, %v1633_v54   ;;  %v1722_v42 = vld [vmem:[%s3249_s2 + $0x18] sm:$0xff] }
  0x50   : > { %2238 = vmatprep.mubr.msk.bf16.mxu0 %vm2669_vm1, %v2668_v1  ;;  %1655 = vperm.xlu1 %2558, %v1635_v7  }
  0x53   : > { %2141 = vmatmul.mubr.msk.bf16.gmra.mrb[8].mxu1 %vm272_vm2, %v2574_v59 }
  0x54   : > { %2144 = vmatprep.mubr.msk.bf16.mxu1 %vm2669_vm1, %v2668_v1  ;;  %1660 = vperm.xlu1 %2558, %v1636_v8  }
  0x57   : > { %2239 = vmatmul.mubr.msk.bf16.vlgmr.msra.gmra.mrb[4].mxu0 %vm272_vm2, %v1184_v36  ;;  %v1728_v36 = vld [vmem:[%s3249_s2 + $0x48] sm:$0xff] }
  0x58   : > { %2259 = vmatpush3.bf16.msra.mxu0 %v1419_v43  ;;  %2242 = vmatprep.mubr.msk.bf16.mxu0 %vm2669_vm1, %v2668_v1  ;;  %v2350_v37 = vpack.c.bf16 %v1728_v36, %v1727_v35  ;;  %v1730_v43 = vld [vmem:[%s3249_s2 + $0x58] sm:$0xff] }
  0x59   : > { %2280 = vmatprep.subr.bf16.mxu0 %v2668_v1  ;;  %1670 = vperm.xlu1 %2558, %v1638_v10   ;;  %v2353_v46 = vpack.c.bf16 %v1730_v43, %v1729_v38 }
  0x5b   : > { %2145 = vmatmul.mubr.msk.bf16.gmra.mrb[12].mxu1 %vm272_vm2, %v2577_v48  ;;  %v1732_v48 = vld [vmem:[%s3249_s2 + $0x68] sm:$0xff] }
  0x5c   : > { %2150 = vmatprep.mubr.msk.bf16.mxu1 %vm2669_vm1, %v2668_v1  ;;  %v2356_v50 = vpack.c.bf16 %v1732_v48, %v1731_v47 }
  0x5d   : > { %1680 = vperm.xlu1 %2558, %v1640_v14  }
  0x5f   : > { %2243 = vmatmul.mubr.msk.bf16.gmra.mrb[8].mxu0 %vm272_vm2, %v1192_v56 }
  0x60   : > { %2246 = vmatprep.mubr.msk.bf16.mxu0 %vm2669_vm1, %v2668_v1 }
  0x61   : > { %1690 = vperm.xlu1 %2558, %v1642_v16  }
  0x63   : > { %2151 = vmatmul.mubr.msk.bf16.vlgmr.msra.gmra.mrb[16].mxu1 %vm272_vm2, %v534_v63 }
  0x64   : > { %2171 = vmatpush3.bf16.msra.mxu1 %v722_v60  ;;  %2154 = vmatprep.mubr.msk.bf16.mxu1 %vm2669_vm1, %v2668_v1 }
  0x65   : > { %2363 = vmatprep.subr.bf16.mxu1 %v2668_v1 }
  0x67   : > { %2247 = vmatmul.mubr.msk.bf16.gmra.mrb[12].mxu0 %vm272_vm2, %v1200_v3 }
  0x68   : > { %2250 = vmatprep.mubr.msk.bf16.mxu0 %vm2669_vm1, %v2668_v1 }
  0x6b   : > { %2155 = vmatmul.mubr.msk.bf16.gmra.mrb[0].mxu1 %vm272_vm2, %v542_v5 }
  0x6c   : > { %2158 = vmatprep.mubr.msk.bf16.mxu1 %vm2669_vm1, %v2668_v1 }
  0x6f   : > { %2251 = vmatmul.mubr.msk.bf16.gmra.mrb[16].mxu0 %vm272_vm2, %v2877_v9  ;;  %v1634_v9 = vld [vmem:[%s3251_s4 + $0x8] sm:$0xff] }
  0x70   : > { %2254 = vmatprep.mubr.msk.bf16.mxu0 %vm2669_vm1, %v2668_v1  ;;  %1650 = vperm.xlu0 %2557, %v1634_v9  }
  0x73   : > { %2159 = vmatmul.mubr.msk.bf16.gmra.mrb[4].mxu1 %vm272_vm2, %v2880_v11  ;;  %v1637_v11 = vld [vmem:[%s3251_s4 + $0x20] sm:$0xff] }
  0x74   : > { %2162 = vmatprep.mubr.msk.bf16.mxu1 %vm2669_vm1, %v2668_v1  ;;  %1665 = vperm.xlu0 %2557, %v1637_v11  }
  0x77   : > { %2255 = vmatmul.mubr.msk.bf16.gmra.mrb[20].mxu0 %vm272_vm2, %v2889_v20  ;;  %v1639_v20 = vld [vmem:[%s3251_s4 + $0x30] sm:$0xff] }
  0x78   : > { %2260 = vmatprep.mubr.msk.bf16.mxu0 %vm2669_vm1, %v2668_v1  ;;  %1675 = vperm.xlu0 %2557, %v1639_v20  }
  0x7b   : > { %2163 = vmatmul.mubr.msk.bf16.gmra.mrb[8].mxu1 %vm272_vm2, %v2892_v21  ;;  %v1641_v21 = vld [vmem:[%s3251_s4 + $0x40] sm:$0xff] }
  0x7c   : > { %2166 = vmatprep.mubr.msk.bf16.mxu1 %vm2669_vm1, %v2668_v1  ;;  %1685 = vperm.xlu0 %2557, %v1641_v21  }
  0x7f   : > { %2261 = vmatmul.mubr.msk.bf16.vlgmr.msra.gmra.mrb[4].mxu0 %vm272_vm2, %v2912_v39  ;;  %v2591_v39 = vld [vmem:[%s2774_s15 + $0x60] sm:$0xff]  }
  0x80   : > { %2281 = vmatpush3.bf16.msra.mxu0 %v1538_v13  ;;  %2264 = vmatprep.mubr.msk.bf16.mxu0 %vm2669_vm1, %v2668_v1 }
  0x83   : > { %2167 = vmatmul.mubr.msk.bf16.gmra.mrb[12].mxu1 %vm272_vm2, %v2915_v40  ;;  %v2593_v40 = vld [vmem:[%s2774_s15 + $0x68] sm:$0xff]  }
  0x84   : > { %2172 = vmatprep.mubr.msk.bf16.mxu1 %vm2669_vm1, %v2668_v1 }
  0x87   : > { %2265 = vmatmul.mubr.msk.bf16.gmra.mrb[8].mxu0 %vm272_vm2, %v2919_v58  ;;  %v2597_v58 = vld [vmem:[%s2774_s15 + $0x78] sm:$0xff]  }
  0x88   : > { %2268 = vmatprep.mubr.msk.bf16.mxu0 %vm2669_vm1, %v2668_v1 }
  0x8b   : > { %2173 = vmatmul.mubr.msk.bf16.vlgmr.msra.gmra.mrb[16].mxu1 %vm272_vm2, %v2591_v39 }
  0x8c   : > { %2364 = vmatpush3.bf16.msra.mxu1 %v2778_v6  ;;  %2176 = vmatprep.mubr.msk.bf16.mxu1 %vm2669_vm1, %v2668_v1  ;;  %v2595_v6 = vld [vmem:[%s2774_s15 + $0x70] sm:$0xff]  }
  0x8f   : > { %2269 = vmatmul.mubr.msk.bf16.gmra.mrb[12].mxu0 %vm272_vm2, %v2931_v2  ;;  %v2599_v2 = vld [vmem:[%s2774_s15 + $0x80] sm:$0xff]  }
  0x90   : > { %2272 = vmatprep.mubr.msk.bf16.mxu0 %vm2669_vm1, %v2668_v1 }
  0x93   : > { %2177 = vmatmul.mubr.msk.bf16.gmra.mrb[0].mxu1 %vm272_vm2, %v2593_v40 }
  0x94   : > { %2180 = vmatprep.mubr.msk.bf16.mxu1 %vm2669_vm1, %v2668_v1 }
  0x97   : > { %2273 = vmatmul.mubr.msk.bf16.gmra.mrb[16].mxu0 %vm272_vm2, %v2944_v15  ;;  %v2600_v15 = vld [vmem:[%s2774_s15 + $0x98] sm:$0xff]  }
  0x98   : > { %2276 = vmatprep.mubr.msk.bf16.mxu0 %vm2669_vm1, %v2668_v1 }
  0x9b   : > { %2181 = vmatmul.mubr.msk.bf16.gmra.mrb[4].mxu1 %vm272_vm2, %v2595_v6 }
  0x9c   : > { %2184 = vmatprep.mubr.msk.bf16.mxu1 %vm2669_vm1, %v2668_v1 }
  0x9f   : > { %2277 = vmatmul.mubr.msk.bf16.gmra.mrb[20].mxu0 %vm272_vm2, %v2952_v41 }
  0xa0   : > { %2282 = vmatprep.mubr.msk.bf16.mxu0 %vm2669_vm1, %v2668_v1 }
  0xa3   : > { %2185 = vmatmul.mubr.msk.bf16.gmra.mrb[8].mxu1 %vm272_vm2, %v2597_v58 }
  0xa4   : > { %2188 = vmatprep.mubr.msk.bf16.mxu1 %vm2669_vm1, %v2668_v1 }
  0xa7   : > { %2283 = vmatmul.mubr.msk.bf16.vlgmr.msra.gmra.mrb[4].mxu0 %vm272_vm2, %v2955_v44 }
  0xa8   : > { %2286 = vmatprep.mubr.msk.bf16.mxu0 %vm2669_vm1, %v2668_v1 }
  0xab   : > { %2189 = vmatmul.mubr.msk.bf16.gmra.mrb[12].mxu1 %vm272_vm2, %v2599_v2 }
  0xac   : > { %2198 = vmatprep.mubr.msk.bf16.mxu1 %vm2669_vm1, %v2668_v1 }
  0xaf   : > { %2287 = vmatmul.mubr.msk.bf16.gmra.mrb[8].mxu0 %vm272_vm2, %v2947_v19  ;;  %v2603_v19 = vld [vmem:[%s2774_s15 + $0xb0] sm:$0xff]   ;;  %s216_s15 = scalar_lea.vmem [#allocation2], %s215_s23 }
  0xb0   : > { %2290 = vmatprep.mubr.msk.bf16.mxu0 %vm2669_vm1, %v2668_v1  ;;  %s1820_s6 = sshll.u32 %s216_s15, 4  ;;  %s3207_s6 = int_to_ptr.vmem [resolvable:$true] %s1820_s6 }
  0xb1   : > { %s2604_s11 = scalar_lea.vmem %s3207_s6, 16  ;;  %p2611_p0 = scmp.lt.s32.totalorder %s3207_s6, %s2609_s12 }
  0xb2   : > { %p2605_p11 = scmp.ne.s32.totalorder %s3207_s6, %s2604_s11  ;;  %p2612_p1 = scmp.lt.s32.totalorder %s2610_s13, %s2604_s11 }
  0xb3   : > { %2199 = vmatmul.mubr.msk.bf16.vlgmr.msra.gmra.mrb[0].mxu1 %vm272_vm2, %v2600_v15 }
  0xb4   : > { %2202 = vmatprep.mubr.msk.bf16.mxu1 %vm2669_vm1, %v2668_v1  ;;  %p2606_p12 = pnand %p2605_p11, %p2741_p5  ;;  %p2613_p2 = por %p2612_p1, %p2611_p0 }
  0xb6   : > { %p2607_p13 = pneg %p2606_p12 }
  0xb7   : > { %2291 = vmatmul.mubr.msk.bf16.gmra.mrb[12].mxu0 %vm272_vm2, %v2959_v27  ;;  %v2671_v27 = vmov 0.0|0.0  }
  0xb8   : > { %2294 = vmatprep.mubr.msk.bf16.mxu0 %vm2669_vm1, %v2668_v1  ;;  %2337 = vmatprep.subr.bf16.mxu0 %v2671_v27  ;;  %p2614_p3 = pnand %p2613_p2, %p2607_p13 }
  0xbb   : > { %2203 = vmatmul.mubr.msk.bf16.gmra.mrb[4].mxu1 %vm272_vm2, %v2601_v17 }
  0xbc   : > { %2206 = vmatprep.mubr.msk.bf16.mxu1 %vm2669_vm1, %v2668_v1 }
  0xbf   : > { %2295 = vmatmul.mubr.msk.bf16.gmra.mrb[16].mxu0 %vm272_vm2, %v2962_v28  ;;  %v2338_v28 = vpack.c.bf16 %v1720_v24, %v1719_v23 }
  0xc0   : > { %2298 = vmatprep.mubr.msk.bf16.mxu0 %vm2669_vm1, %v2668_v1 }
  0xc1   : > { %2339 = vmatpush3.bf16.msra.mxu0 %v2338_v28 }
  0xc2   : > { %2340 = vmatprep.subr.bf16.mxu0 %v2671_v27 }
  0xc3   : > { %2207 = vmatmul.mubr.msk.bf16.gmra.mrb[8].mxu1 %vm272_vm2, %v2602_v18 }
  0xc4   : > { %2210 = vmatprep.mubr.msk.bf16.mxu1 %vm2669_vm1, %v2668_v1 }
  0xc7   : > { %2299 = vmatmul.mubr.msk.bf16.gmra.mrb[20].mxu0 %vm272_vm2, %v2968_v30  ;;  %v1724_v30 = vld [vmem:[%s3249_s2 + $0x28] sm:$0xff] }
  0xc8   : > { %2334 = vmatprep.mubr.msk.f32.mxu0 %vm2669_vm1, %v2668_v1  ;;  %v1721_v1 = vld [vmem:[%s3249_s2 + $0x10] sm:$0xff]  ;;  %v2344_v59 = vpack.c.bf16 %v1724_v30, %v1723_v29 }
  0xc9   : > { %v2341_v49 = vpack.c.bf16 %v1722_v42, %v1721_v1 }
  0xcb   : > { %2211 = vmatmul.mubr.msk.bf16.gmra.mrb[12].mxu1 %vm272_vm2, %v2603_v19  ;;  %2342 = vmatpush3.bf16.msra.mxu0 %v2341_v49 }
  0xcc   : > { %2343 = vmatprep.subr.bf16.mxu0 %v2671_v27 }
  0xce   : > { %v1646_v62 = vpop.permute.xlu0 %1645 }
  0xcf   : > { %2345 = vmatpush3.bf16.msra.mxu0 %v2344_v59  ;;  %v1656_v14 = vpop.permute.xlu1 %1655 }
  0xd0   : > { %2346 = vmatprep.subr.bf16.mxu0 %v2671_v27 }
  0xd3   : > { %2348 = vmatpush3.bf16.msra.mxu0 %v2347_v33 }
  0xd4   : > { %2349 = vmatprep.subr.bf16.mxu0 %v2671_v27 }
  0xd7   : > { %2351 = vmatpush3.bf16.msra.mxu0 %v2350_v37 }
  0xd8   : > { %2352 = vmatprep.subr.bf16.mxu0 %v2671_v27 }
  0xdb   : > { %2354 = vmatpush3.bf16.msra.mxu0 %v2353_v46 }
  0xdc   : > { %2355 = vmatprep.subr.bf16.mxu0 %v2671_v27 }
  0xdf   : > { %2357 = vmatpush3.bf16.msra.mxu0 %v2356_v50 }
  0xe0   : > { %2358 = vmatprep.subr.bf16.mxu0 %v2671_v27 }
  0xe3   : > { %2360 = vmatpush3.bf16.msra.mxu0 %v2359_v25 }
  0xee   : > { %v326_v22 = vpop.f32.mrb[0].mxu0 }
  0xef   : > { %v2108_v26 = vpop.f32.mrb[1].mxu0  ;;  %v1651_v7 = vpop.permute.xlu0 %1650 }
  0xf0   : > { %v329_v41 = vpop.f32.mrb[2].mxu0  ;;  %v1661_v26 = vpop.permute.xlu1 %1660 }
  0xf1   : > { %v2109_v44 = vpop.f32.mrb[3].mxu0 }
  0xf3   : > { %v1666_v32 = vpop.permute.xlu0 %1665 }
  0xf4   : > { %v1671_v37 = vpop.permute.xlu1 %1670 }
 0x15e   : > { %v758_v53 = vpop.f32.mrb[16].mxu1 }
 0x15f   : > { %v2365_v56 = vadd.f32 %v758_v53, %v326_v22  ;;  %v2174_v57 = vpop.f32.mrb[17].mxu1 }
 0x160   : > { %v761_v34 = vpop.f32.mrb[18].mxu1 }
 0x161   : > { %v2367_v45 = vadd.f32 %v761_v34, %v329_v41  ;;  %v2175_v61 = vpop.f32.mrb[19].mxu1  ;;  %v1676_v34 = vpop.permute.xlu0 %1675 }
 0x17a   : > { %v1574_v63 = vpop.f32.mrb[4].mxu0 }
 0x17b   : > { %v2366_v0 = vadd.f32 %v2365_v56, %v1574_v63  ;;  %v2284_v60 = vpop.f32.mrb[5].mxu0 }
 0x17c   : > { %v1577_v3 = vpop.f32.mrb[6].mxu0 }
 0x17d   : > { %v1623_v4 = vmax.f32 %v2366_v0, 0.0  ;;  %v2368_v5 = vadd.f32 %v2367_v45, %v1577_v3  ;;  %v2285_v54 = vpop.f32.mrb[7].mxu0  ;;  %v1681_v0 = vpop.permute.xlu1 %1680 }
 0x17f   : > { %v1624_v55 = vmax.f32 %v2368_v5, 0.0  ;;  %v1693_v9 = vmul.f32 %v1646_v62, %v1623_v4 }
 0x181   : > { %v1694_v8 = vmul.f32 %v1651_v7, %v1624_v55 }
 0x182   : > { %v1582_v11 = vpop.f32.mrb[8].mxu0 }
 0x183   : > { %v1703_v10 = vadd.f32 %v1694_v8, %v1693_v9  ;;  %v2288_v12 = vpop.f32.mrb[9].mxu0 }
 0x184   : > { %v1585_v20 = vpop.f32.mrb[10].mxu0  ;;  %v1686_v12 = vpop.permute.xlu0 %1685 }
 0x185   : > { %v2289_v13 = vpop.f32.mrb[11].mxu0 }
 0x186   : > { %v905_v21 = vpop.f32.mrb[0].mxu1 }
 0x187   : > { %v2369_v16 = vadd.f32 %v1582_v11, %v905_v21  ;;  %v2200_v39 = vpop.f32.mrb[1].mxu1 }
 0x188   : > { %v908_v40 = vpop.f32.mrb[2].mxu1 }
 0x189   : > { %v1625_v6 = vmax.f32 %v2369_v16, 0.0  ;;  %v2370_v58 = vadd.f32 %v1585_v20, %v908_v40  ;;  %v2201_v2 = vpop.f32.mrb[3].mxu1 }
 0x18a   : > { %v1590_v15 = vpop.f32.mrb[12].mxu0 }
 0x18b   : > { %v2292_v17 = vpop.f32.mrb[13].mxu0  ;;  %v1695_v18 = vmul.f32 %v1656_v14, %v1625_v6  ;;  %v1626_v19 = vmax.f32 %v2370_v58, 0.0  ;;  %v1691_v14 = vpop.permute.xlu1 %1690 }
 0x18c   : > { %v1593_v22 = vpop.f32.mrb[14].mxu0 }
 0x18d   : > { %v2293_v41 = vpop.f32.mrb[15].mxu0  ;;  %v1704_v44 = vadd.f32 %v1703_v10, %v1695_v18  ;;  %v1696_v23 = vmul.f32 %v1661_v26, %v1626_v19  ;;  %v1735_v18 = vld [vmem:[%s3250_s3] sm:$0x1] }
 0x18e   : > { %v913_v24 = vpop.f32.mrb[4].mxu1 }
 0x18f   : > { %v1705_v27 = vadd.f32 %v1704_v44, %v1696_v23  ;;  %v2371_v28 = vadd.f32 %v1590_v15, %v913_v24  ;;  %v2204_v1 = vpop.f32.mrb[5].mxu1 }
 0x190   : > { %v916_v42 = vpop.f32.mrb[6].mxu1 }
 0x191   : > { %v1627_v49 = vmax.f32 %v2371_v28, 0.0  ;;  %v2372_v29 = vadd.f32 %v1593_v22, %v916_v42  ;;  %v2205_v30 = vpop.f32.mrb[7].mxu1 }
 0x192   : > { %v1598_v59 = vpop.f32.mrb[16].mxu0 }
 0x193   : > { %v2296_v31 = vpop.f32.mrb[17].mxu0  ;;  %v1697_v33 = vmul.f32 %v1666_v32, %v1627_v49  ;;  %v1628_v35 = vmax.f32 %v2372_v29, 0.0 }
 0x194   : > { %v1601_v36 = vpop.f32.mrb[18].mxu0 }
 0x195   : > { %v2297_v38 = vpop.f32.mrb[19].mxu0  ;;  %v1706_v43 = vadd.f32 %v1705_v27, %v1697_v33  ;;  %v1698_v46 = vmul.f32 %v1671_v37, %v1628_v35 }
 0x196   : > { %v921_v47 = vpop.f32.mrb[8].mxu1 }
 0x197   : > { %v1707_v48 = vadd.f32 %v1706_v43, %v1698_v46  ;;  %v2373_v50 = vadd.f32 %v1598_v59, %v921_v47  ;;  %v2208_v51 = vpop.f32.mrb[9].mxu1 }
 0x198   : > { %v924_v52 = vpop.f32.mrb[10].mxu1 }
 0x199   : > { %v1629_v25 = vmax.f32 %v2373_v50, 0.0  ;;  %v2374_v53 = vadd.f32 %v1601_v36, %v924_v52  ;;  %v2209_v56 = vpop.f32.mrb[11].mxu1 }
 0x19a   : > { %v1606_v57 = vpop.f32.mrb[20].mxu0 }
 0x19b   : > { %v2300_v45 = vpop.f32.mrb[21].mxu0  ;;  %v1699_v61 = vmul.f32 %v1676_v34, %v1629_v25  ;;  %v1630_v62 = vmax.f32 %v2374_v53, 0.0 }
 0x19c   : > { %v1609_v63 = vpop.f32.mrb[22].mxu0 }
 0x19d   : > { %v2301_v60 = vpop.f32.mrb[23].mxu0  ;;  %v1708_v3 = vadd.f32 %v1707_v48, %v1699_v61  ;;  %v1700_v4 = vmul.f32 %v1681_v0, %v1630_v62 }
 0x19e   : > { %v929_v5 = vpop.f32.mrb[12].mxu1 }
 0x19f   : > { %v1709_v54 = vadd.f32 %v1708_v3, %v1700_v4  ;;  %v2375_v7 = vadd.f32 %v1606_v57, %v929_v5  ;;  %v2212_v55 = vpop.f32.mrb[13].mxu1 }
 0x1a0   : > { %v932_v9 = vpop.f32.mrb[14].mxu1 }
 0x1a1   : > { %v1631_v8 = vmax.f32 %v2375_v7, 0.0  ;;  %v2376_v11 = vadd.f32 %v1609_v63, %v932_v9  ;;  %v2213_v10 = vpop.f32.mrb[15].mxu1 }
 0x1a3   : > { %v1701_v20 = vmul.f32 %v1686_v12, %v1631_v8  ;;  %v1632_v13 = vmax.f32 %v2376_v11, 0.0 }
 0x1a5   : > { %v1710_v21 = vadd.f32 %v1709_v54, %v1701_v20  ;;  %v1702_v16 = vmul.f32 %v1691_v14, %v1632_v13 }
 0x1a7   : > { %v1711_v39 = vadd.f32 %v1710_v21, %v1702_v16 }
 0x1a9   : > { %v1712_v40 = vrot.slane %v1711_v39, 4 }
 0x1ab   : > { %v1713_v6 = vadd.f32 %v1712_v40, %v1711_v39 }
 0x1ad   : > { %v1714_v58 = vrot.slane %v1713_v6, 2 }
 0x1af   : > { %v1715_v2 = vadd.f32 %v1714_v58, %v1713_v6 }
 0x1b1   : > { %v1716_v15 = vrot.slane %v1715_v2, 1 }
 0x1b3   : > { %v1717_v17 = vadd.f32 %v1716_v15, %v1715_v2 }
 0x1b5   : > { %2335 = vmatmul.mubr.f32.vlgmr.msra.gmra.mrb[24].mxu0 %v1717_v17 }
 0x288   : > { %v1802_v19 = vpop.f32.mrb[24].mxu0 }
 0x289   : > { %v1803_v22 = vadd.f32 %v1802_v19, %v1735_v18  ;;  %v2336_v26 = vpop.f32.mrb[25].mxu0 }
 0x28b   : > { %1806 = vst [vmem:[%s216_s15] sm:$0x1] %v1803_v22 }
 0x28c   : > { %2617 = shalt.err (!%p2614_p3)
}
 0x28d   : > { %s2618_s14 = scalar_lea.hbm %s3205_s9, 16  ;;  %s2622_s23 = scalar_lea.hbm %s3252_s5, 32 }
 0x28e   : > { %p2619_p4 = scmp.ne.s32.totalorder %s3205_s9, %s2618_s14  ;;  %p2623_p9 = scmp.lt.u32.totalorder %s3205_s9, %s3252_s5 }
 0x28f   : > { %p2624_p10 = scmp.lt.u32.totalorder %s2622_s23, %s2618_s14  ;;  %p2626_p12 = scmp.lt.u32.totalorder %s2618_s14, %s3205_s9 }
 0x290   : > { %p2620_p7 = pnand %p2619_p4, %p2741_p5 }
 0x291   : > { %p2625_p11 = por %p2624_p10, %p2623_p9 }
 0x292   : > { %p2621_p8 = pneg %p2620_p7 }
 0x293   : > { %p2627_p13 = por %p2626_p12, %p2625_p11 }
 0x295   : > { %p2628_p0 = pnand %p2627_p13, %p2621_p8 }
 0x297   : > { %2631 = shalt.err (!%p2628_p0)
}
 0x298   : > { %2514 = dma.vmem_to_hbm [thread:$0]  (%p2741_p5), %s3207_s6, 16, %s3205_s9, %s1808_s10  }
 0x299 PF: > { %p2520_p1 = scmp.ge.s32.totalorder %s2666_s21, 2  ;;  %s1832_s30 = sand.u32 1, %s2654_s18  }
 0x29a   : > { %s1833_s15 = scalar_lea.sflag [#allocation3], %s1832_s30 }
 0x29b   : > { %p2517_p2 = pnand %p2520_p1, %p2745_p6 }
 0x29d   : > { %2649 = dma.done.wait (!%p2517_p2), %s1833_s15, 16  }
 0x29e   : > { %2651 = vsyncadd (!%p2517_p2), %s1833_s15, 4294967280  ;;  %p15_p3 = scmp.ge.s32.totalorder %s2728_s24, 4   ;;  %s3255_s18 = smov %s2658_s19 }
 0x29f   : > { %s3256_s19 = smov %s2662_s20  ;;  %s3257_s20 = smov %s2739_s27 }
 0x2a0   : > { %s3258_s21 = smov %s2728_s24  ;;  %17 = sbr.rel (!%p15_p3) target bundleno = 3 (0x3), region = 86 }
 0x2a7   :  { %1837 = vsyncpa [#allocation3], 1 }
 0x2a8   :  { %1839 = vsyncpa [#allocation3 + $0x1], 1 }

</bundles_post_ra>
